<compile_context>
chip_gen: v5e
topology: v5e:2x2
jax: 0.10.0
libtpu: 0.0.40
codegen_flags: <defaults>
</compile_context>

<pallas_src>
import math

import jax
import jax.numpy as jnp
from jax import lax
from jax.experimental import pallas as pl
from jax.experimental.pallas import tpu as pltpu


def _round_up(x, m):
    return ((x + m - 1) // m) * m


def conv_relu_pallas(x, weight, bias, *, stride=1, relu=True,
                     row_target=1024, compute_dtype=jnp.bfloat16,
                     vmem_limit_bytes=None):
    """Fused Conv2d (stride=1, 'same' padding, bias) [+ ReLU].

    x:      (B, Cin, H, W)      NCHW (PyTorch layout)
    weight: (Cout, Cin, KH, KW) OIHW (PyTorch layout)
    bias:   (Cout,)
    """
    assert stride == 1, "only stride=1 implemented"
    # TODO(synk): stride > 1 path not implemented (module default stride=1).
    # TODO(synk): bn=True (BatchNorm2d) path not implemented (module default bn=False).
    B, Cin, H, W = x.shape
    Cout, Cin_w, KH, KW = weight.shape
    assert Cin == Cin_w
    assert KH % 2 == 1 and KW % 2 == 1, "only odd kernel sizes (true 'same' padding)"
    # TODO(synk): even kernel sizes (PyTorch padding=(k-1)//2 -> H-1 output) not implemented.
    pad_h, pad_w = (KH - 1) // 2, (KW - 1) // 2

    if compute_dtype is None:
        compute_dtype = x.dtype
    out_dtype = x.dtype

    def _pack(dt):  # sublane packing of a dtype (rows per 32-bit sublane group)
        return {4: 8, 2: 16, 1: 32}[jnp.dtype(dt).itemsize]

    # ---- geometry -----------------------------------------------------------
    Cout_p = _round_up(Cout, 128)                      # lane-dense output / MXU N fill
    Wk = _round_up(W, max(_pack(compute_dtype), _pack(out_dtype)))   # aligned reshapes
    KWC = KW * Cin

    # rows per grid step = tile_h * Wk: big enough to amortize per-step overhead,
    # a multiple of 128 (MXU M dim) when that does not blow past the image height.
    t128 = 128 // math.gcd(Wk, 128)
    tile_h = max(t128, _round_up(max(1, row_target // Wk), t128))
    tile_h = min(tile_h, _round_up(H, t128))
    Hp = _round_up(H, tile_h)
    num_j = Hp // tile_h
    rows = tile_h * Wk
    Hwin = Hp + 2 * pad_h

    # ---- operand prep (XLA side) -------------------------------------------
    # NCHW -> NHWC, zero-pad H (halo + ragged tiles) and W (halo + alignment), then fold the
    # KW taps into the channel axis:  xcat[b,h,w,kw*Cin+c] = x_pad[b,h,w+kw,c].
    # The kernel then contracts over K = KW*Cin per kh (KH matmuls instead of KH*KW) with no
    # in-kernel strided-window copies.  Costs one extra HBM pass over the (KW x) input; for
    # the small-Cin layers this module targets the output bytes dominate anyway.
    # TODO(synk): fuse this layout pass into the kernel input DMA
    #             (CompilerParams(allow_input_fusion=...)) to remove the extra HBM round-trip.
    x_nhwc = jnp.transpose(x, (0, 2, 3, 1)).astype(compute_dtype)          # (B, H, W, Cin)
    x_pad = jnp.pad(x_nhwc, ((0, 0),
                             (pad_h, pad_h + Hp - H),
                             (pad_w, pad_w + Wk - W),
                             (0, 0)))                                       # (B, Hwin, Wk+2pw, Cin)
    xcat = jnp.concatenate([x_pad[:, :, kw:kw + Wk, :] for kw in range(KW)],
                           axis=-1)                                         # (B, Hwin, Wk, KW*Cin)

    # OIHW -> (KH, KW*Cin, Cout_p) (channel order matches xcat), zero-padded Cout.
    w_r = jnp.transpose(weight, (2, 3, 1, 0)).reshape(KH, KWC, Cout)
    w_r = jnp.pad(w_r, ((0, 0), (0, 0), (0, Cout_p - Cout))).astype(compute_dtype)
    b_r = jnp.pad(bias, (0, Cout_p - Cout)).reshape(1, Cout_p).astype(jnp.float32)

    # ---- kernel -------------------------------------------------------------
    def kernel(x_ref, w_ref, b_ref, o_ref, acc_ref):
        j = pl.program_id(1)
        start = pl.multiple_of(j * tile_h, tile_h)
        # Input window with H halo: (tile_h + 2*pad_h, Wk, KW*Cin); loaded once per step.
        xwin = x_ref[0, pl.ds(start, tile_h + 2 * pad_h), :, :]
        for kh in range(KH):                     # static, fully unrolled: KH MXU matmuls
            lhs = xwin[kh:kh + tile_h].reshape(rows, KWC)   # leading-dim slice, aligned reshape
            part = jnp.dot(lhs, w_ref[kh], preferred_element_type=jnp.float32)
            if kh == 0:
                acc_ref[...] = part              # f32 accumulation in VMEM scratch
            else:
                acc_ref[...] += part
        acc = acc_ref[...] + b_ref[...]          # bias + ReLU fused, all in f32
        if relu:
            acc = jnp.maximum(acc, 0.0)
        o_ref[...] = acc.astype(o_ref.dtype)     # lane-dense store (Cout_p % 128 == 0)

    # ---- VMEM budget / cost estimate ----------------------------------------
    cd_b = jnp.dtype(compute_dtype).itemsize
    out_b = jnp.dtype(out_dtype).itemsize
    x_blk = Hwin * Wk * KWC * cd_b
    w_blk = KH * KWC * Cout_p * cd_b
    o_blk = rows * Cout_p * out_b
    acc_blk = rows * Cout_p * 4
    need = 2 * (x_blk + w_blk + o_blk) + acc_blk + 2 * Cout_p * 4
    if vmem_limit_bytes is None:
        vmem_limit_bytes = min(100 << 20, max(24 << 20, int(need * 1.3) + (8 << 20)))
    # TODO(synk): for very large images on v7x (64 MiB VMEM) switch the input to
    #             memory_space=pl.ANY + manual double-buffered halo DMA instead of keeping
    #             the whole padded image resident per batch element.

    flops = 2 * B * num_j * rows * KWC * Cout_p * KH
    bytes_accessed = (xcat.size * cd_b + w_r.size * cd_b + b_r.size * 4
                      + B * num_j * rows * Cout_p * out_b)

    out2d = pl.pallas_call(
        kernel,
        out_shape=jax.ShapeDtypeStruct((B * num_j * rows, Cout_p), out_dtype),
        grid_spec=pltpu.PrefetchScalarGridSpec(
            num_scalar_prefetch=0,
            grid=(B, num_j),
            in_specs=[
                # whole padded image of the current batch element (H halo handled in-kernel)
                pl.BlockSpec((1, Hwin, Wk, KWC), lambda b, j: (b, 0, 0, 0)),
                # grid-invariant weights / bias stay resident across steps
                pl.BlockSpec((KH, KWC, Cout_p), lambda b, j: (0, 0, 0)),
                pl.BlockSpec((1, Cout_p), lambda b, j: (0, 0)),
            ],
            out_specs=pl.BlockSpec((rows, Cout_p), lambda b, j: (b * num_j + j, 0)),
            scratch_shapes=[pltpu.VMEM((rows, Cout_p), jnp.float32)],
        ),
        compiler_params=pltpu.CompilerParams(
            dimension_semantics=("parallel", "parallel"),
            vmem_limit_bytes=vmem_limit_bytes,
        ),
        cost_estimate=pl.CostEstimate(
            flops=flops, transcendentals=0, bytes_accessed=bytes_accessed),
    )(xcat, w_r, b_r)

    out = out2d.reshape(B, Hp, Wk, Cout_p)[:, :H, :W, :Cout]   # drop pad rows/cols/channels
    return jnp.transpose(out, (0, 3, 1, 2))                    # back to NCHW


def conv_relu_ref(x, weight, bias, relu=True):
    KH, KW = weight.shape[2], weight.shape[3]
    ph, pw = (KH - 1) // 2, (KW - 1) // 2
    out = lax.conv_general_dilated(
        x, weight, window_strides=(1, 1),
        padding=((ph, ph), (pw, pw)),
        dimension_numbers=("NCHW", "OIHW", "NCHW"))
    out = out + bias.reshape(1, -1, 1, 1)
    if relu:
        out = jnp.maximum(out, 0.0)
    return out


if __name__ == "__main__":
    # Small shapes consistent with the module: Conv(inp_dim=16, out_dim=32), 16x16 images.
    B, Cin, Cout, H, W, K = 2, 16, 32, 16, 16, 3

    key = jax.random.PRNGKey(0)
    kx, kw, kb = jax.random.split(key, 3)

    x = jax.random.normal(kx, (B, Cin, H, W), dtype=jnp.float32)
    bound = 1.0 / math.sqrt(Cin * K * K)        # PyTorch Conv2d default init bounds
    weight = jax.random.uniform(kw, (Cout, Cin, K, K),
                                minval=-bound, maxval=bound, dtype=jnp.float32)
    bias = jax.random.uniform(kb, (Cout,),
                              minval=-bound, maxval=bound, dtype=jnp.float32)

    # Default path: bf16 MXU operands, f32 accumulation.
    out_bf16 = jax.block_until_ready(conv_relu_pallas(x, weight, bias))
    # Exact f32 path (numerics identical to the PyTorch module up to fp rounding).
    out_f32 = jax.block_until_ready(conv_relu_pallas(x, weight, bias, compute_dtype=None))

    ref = conv_relu_ref(x, weight, bias)
    assert out_bf16.shape == (B, Cout, H, W)
    assert out_f32.shape == (B, Cout, H, W)
    assert jnp.allclose(out_f32, ref, atol=1e-4, rtol=1e-4), "f32 path mismatch vs reference"
    assert jnp.allclose(out_bf16, ref, atol=5e-2, rtol=5e-2), "bf16 path mismatch vs reference"

    print("KERNEL_OK")
</pallas_src>

<mosaic_0001>
module attributes {stable_mosaic.version = 11 : i64} {
  func.func @kernel(%arg0: i32, %arg1: i32, %arg2: memref<1x18x16x48xbf16, #tpu.memory_space<vmem>>, %arg3: memref<3x48x128xbf16, #tpu.memory_space<vmem>>, %arg4: memref<1x128xf32, #tpu.memory_space<vmem>>, %arg5: memref<256x128xf32, #tpu.memory_space<vmem>>, %arg6: memref<256x128xf32, #tpu.memory_space<vmem>>) attributes {dimension_semantics = [#tpu.dimension_semantics<parallel>, #tpu.dimension_semantics<parallel>], iteration_bounds = array<i64: 2, 1>, scalar_prefetch = 0 : i64, scratch_operands = 1 : i64, tpu.core_type = #tpu.core_type<tc>, window_params = [{transform_indices = @transform_0, window_bounds = array<i64: 1, 18, 16, 48>}, {pipeline_mode = #tpu.pipeline_mode<synchronous>, transform_indices = @transform_1, window_bounds = array<i64: 3, 48, 128>}, {pipeline_mode = #tpu.pipeline_mode<synchronous>, transform_indices = @transform_2, window_bounds = array<i64: 1, 128>}, {transform_indices = @transform_3, window_bounds = array<i64: 256, 128>}]} {
    %c16_i32 = arith.constant 16 : i32
    %0 = arith.muli %arg1, %c16_i32 : i32
    %1 = tpu.assume_multiple %0, 16 : i32
    %c0 = arith.constant 0 : index
    %2 = arith.index_cast %1 : i32 to index
    %c0_0 = arith.constant 0 : index
    %c0_1 = arith.constant 0 : index
    %3 = vector.load %arg2[%c0, %2, %c0_0, %c0_1] : memref<1x18x16x48xbf16, #tpu.memory_space<vmem>>, vector<1x18x16x48xbf16>
    %4 = vector.shape_cast %3 : vector<1x18x16x48xbf16> to vector<18x16x48xbf16>
    %5 = vector.extract_strided_slice %4 {offsets = [0, 0, 0], sizes = [16, 16, 48], strides = [1, 1, 1]} : vector<18x16x48xbf16> to vector<16x16x48xbf16>
    %6 = vector.shape_cast %5 : vector<16x16x48xbf16> to vector<256x48xbf16>
    %c0_2 = arith.constant 0 : index
    %c0_3 = arith.constant 0 : index
    %c0_4 = arith.constant 0 : index
    %7 = vector.load %arg3[%c0_2, %c0_3, %c0_4] : memref<3x48x128xbf16, #tpu.memory_space<vmem>>, vector<1x48x128xbf16>
    %8 = vector.shape_cast %7 : vector<1x48x128xbf16> to vector<48x128xbf16>
    %cst = arith.constant dense<0.000000e+00> : vector<256x128xf32>
    %9 = tpu.matmul %6, %8, %cst {dimension_numbers = #tpu.dot_dimension_numbers<[1], [0], [0], [1], [0, 0, 1, 1], [], []>} : vector<256x48xbf16>, vector<48x128xbf16>, vector<256x128xf32> -> vector<256x128xf32>
    %c0_5 = arith.constant 0 : index
    %c0_6 = arith.constant 0 : index
    %10 = vector.load %arg6[%c0_5, %c0_6] : memref<256x128xf32, #tpu.memory_space<vmem>>, vector<256x128xf32>
    tpu.vector_store %arg6[%c0_5, %c0_6], %9 {strides = array<i32>} : memref<256x128xf32, #tpu.memory_space<vmem>>, vector<256x128xf32>,
    %11 = vector.extract_strided_slice %4 {offsets = [1, 0, 0], sizes = [16, 16, 48], strides = [1, 1, 1]} : vector<18x16x48xbf16> to vector<16x16x48xbf16>
    %12 = vector.shape_cast %11 : vector<16x16x48xbf16> to vector<256x48xbf16>
    %c1 = arith.constant 1 : index
    %c0_7 = arith.constant 0 : index
    %c0_8 = arith.constant 0 : index
    %13 = vector.load %arg3[%c1, %c0_7, %c0_8] : memref<3x48x128xbf16, #tpu.memory_space<vmem>>, vector<1x48x128xbf16>
    %14 = vector.shape_cast %13 : vector<1x48x128xbf16> to vector<48x128xbf16>
    %cst_9 = arith.constant dense<0.000000e+00> : vector<256x128xf32>
    %15 = tpu.matmul %12, %14, %cst_9 {dimension_numbers = #tpu.dot_dimension_numbers<[1], [0], [0], [1], [0, 0, 1, 1], [], []>} : vector<256x48xbf16>, vector<48x128xbf16>, vector<256x128xf32> -> vector<256x128xf32>
    %c0_10 = arith.constant 0 : index
    %c0_11 = arith.constant 0 : index
    %16 = vector.load %arg6[%c0_10, %c0_11] : memref<256x128xf32, #tpu.memory_space<vmem>>, vector<256x128xf32>
    %17 = arith.addf %16, %15 : vector<256x128xf32>
    %c0_12 = arith.constant 0 : index
    %c0_13 = arith.constant 0 : index
    %18 = vector.load %arg6[%c0_12, %c0_13] : memref<256x128xf32, #tpu.memory_space<vmem>>, vector<256x128xf32>
    tpu.vector_store %arg6[%c0_12, %c0_13], %17 {strides = array<i32>} : memref<256x128xf32, #tpu.memory_space<vmem>>, vector<256x128xf32>,
    %19 = vector.extract_strided_slice %4 {offsets = [2, 0, 0], sizes = [16, 16, 48], strides = [1, 1, 1]} : vector<18x16x48xbf16> to vector<16x16x48xbf16>
    %20 = vector.shape_cast %19 : vector<16x16x48xbf16> to vector<256x48xbf16>
    %c2 = arith.constant 2 : index
    %c0_14 = arith.constant 0 : index
    %c0_15 = arith.constant 0 : index
    %21 = vector.load %arg3[%c2, %c0_14, %c0_15] : memref<3x48x128xbf16, #tpu.memory_space<vmem>>, vector<1x48x128xbf16>
    %22 = vector.shape_cast %21 : vector<1x48x128xbf16> to vector<48x128xbf16>
    %cst_16 = arith.constant dense<0.000000e+00> : vector<256x128xf32>
    %23 = tpu.matmul %20, %22, %cst_16 {dimension_numbers = #tpu.dot_dimension_numbers<[1], [0], [0], [1], [0, 0, 1, 1], [], []>} : vector<256x48xbf16>, vector<48x128xbf16>, vector<256x128xf32> -> vector<256x128xf32>
    %c0_17 = arith.constant 0 : index
    %c0_18 = arith.constant 0 : index
    %24 = vector.load %arg6[%c0_17, %c0_18] : memref<256x128xf32, #tpu.memory_space<vmem>>, vector<256x128xf32>
    %25 = arith.addf %24, %23 : vector<256x128xf32>
    %c0_19 = arith.constant 0 : index
    %c0_20 = arith.constant 0 : index
    %26 = vector.load %arg6[%c0_19, %c0_20] : memref<256x128xf32, #tpu.memory_space<vmem>>, vector<256x128xf32>
    tpu.vector_store %arg6[%c0_19, %c0_20], %25 {strides = array<i32>} : memref<256x128xf32, #tpu.memory_space<vmem>>, vector<256x128xf32>,
    %c0_21 = arith.constant 0 : index
    %c0_22 = arith.constant 0 : index
    %27 = vector.load %arg6[%c0_21, %c0_22] : memref<256x128xf32, #tpu.memory_space<vmem>>, vector<256x128xf32>
    %c0_23 = arith.constant 0 : index
    %c0_24 = arith.constant 0 : index
    %28 = vector.load %arg4[%c0_23, %c0_24] : memref<1x128xf32, #tpu.memory_space<vmem>>, vector<1x128xf32>
    %29 = vector.broadcast %28 : vector<1x128xf32> to vector<256x128xf32>
    %30 = arith.addf %27, %29 : vector<256x128xf32>
    %cst_25 = arith.constant 0.000000e+00 : f32
    %31 = vector.broadcast %cst_25 : f32 to vector<256x128xf32>
    %32 = arith.maximumf %30, %31 : vector<256x128xf32>
    %c0_26 = arith.constant 0 : index
    %c0_27 = arith.constant 0 : index
    %33 = vector.load %arg5[%c0_26, %c0_27] : memref<256x128xf32, #tpu.memory_space<vmem>>, vector<256x128xf32>
    tpu.vector_store %arg5[%c0_26, %c0_27], %32 {strides = array<i32>} : memref<256x128xf32, #tpu.memory_space<vmem>>, vector<256x128xf32>,
    return
  }
  func.func @transform_0(%arg0: i32, %arg1: i32) -> (i32, i32, i32, i32) {
    %c0_i32 = arith.constant 0 : i32
    %c0_i32_0 = arith.constant 0 : i32
    %c0_i32_1 = arith.constant 0 : i32
    %c0_i32_2 = arith.constant 0 : i32
    return %arg0, %c0_i32, %c0_i32_0, %c0_i32_1 : i32, i32, i32, i32
  }
  func.func @transform_1(%arg0: i32, %arg1: i32) -> (i32, i32, i32) {
    %c0_i32 = arith.constant 0 : i32
    %c0_i32_0 = arith.constant 0 : i32
    %c0_i32_1 = arith.constant 0 : i32
    %c0_i32_2 = arith.constant 0 : i32
    return %c0_i32, %c0_i32_0, %c0_i32_1 : i32, i32, i32
  }
  func.func @transform_2(%arg0: i32, %arg1: i32) -> (i32, i32) {
    %c0_i32 = arith.constant 0 : i32
    %c0_i32_0 = arith.constant 0 : i32
    %c0_i32_1 = arith.constant 0 : i32
    return %c0_i32, %c0_i32_0 : i32, i32
  }
  func.func @transform_3(%arg0: i32, %arg1: i32) -> (i32, i32) {
    %c1_i32 = arith.constant 1 : i32
    %0 = arith.muli %arg0, %c1_i32 : i32
    %1 = arith.addi %0, %arg1 : i32
    %c0_i32 = arith.constant 0 : i32
    %c0_i32_0 = arith.constant 0 : i32
    return %1, %c0_i32 : i32, i32
  }
}

</mosaic_0001>

<bundles_post_ra>
// kernel: tpu_custom_call.1
= control target key start
LH: loop header
LB: loop body
LE: loop exit
PB: predicated region body
PF: predicated region fallthrough
CT: control target
= control target key end

     0   :  { %8 = vsyncpa [#allocation4], 0  ;;  %s2027_s0 = inlined_call_operand.hbm [shape: bf16[2,18,16,48], index: 0, kind: input, shape index: {}]   ;;  %s2028_s1 = inlined_call_operand.hbm [shape: bf16[3,48,128], index: 1, kind: input, shape index: {}]   ;;  %s2029_s2 = inlined_call_operand.vmem [shape: f32[1,128], index: 2, kind: input, shape index: {}]   ;;  %s2030_s3 = inlined_call_operand.hbm [shape: f32[512,128], index: 3, kind: output, shape index: {}]  }
   0x1   :  { %10 = vsyncpa [#allocation4 + $0x1], 0 }
   0x2   :  { %11 = vsyncpa [#allocation7], 0 }
   0x3   :  { %12 = vsyncpa [#allocation5], 0 }
   0x4   :  { %14 = vsyncpa [#allocation5 + $0x1], 0  ;;  %s1679_s12 = smov 0   ;;  %s1681_s13 = smov 0  }
   0x5   :  { %s1683_s14 = smov 0   ;;  %s1685_s15 = smov 0  }
   0x6   :  { %s1687_s16 = smov 0   ;;  %s1689_s17 = smov 0  }
   0x7 LB: > { %s1218_s18 = sadd.s32 4294967295, %s1652_s17   ;;  %s1219_s19 = sadd.s32 4294967294, %s1652_s17   ;;  %s1652_s17 = sphi %s1689_s17, %s20_s17   ;;  %s1648_s16 = sphi %s1687_s16, %s2041_s16   ;;  %s1644_s15 = sphi %s1685_s15, %s2040_s15   ;;  %s1640_s14 = sphi %s1683_s14, %s2039_s14   ;;  %s1636_s13 = sphi %s1681_s13, %s2038_s13   ;;  %s1632_s12 = sphi %s1679_s12, %s2037_s12  }
   0x8   : > { %p52_p0 = scmp.ne.s32.totalorder %s1636_s13, %s1632_s12  ;;  %p1713_p1 = scmp.eq.s32.totalorder %s1218_s18, 0 }
   0x9   : > { %p1717_p2 = scmp.eq.s32.totalorder %s1218_s18, 1  ;;  %p126_p3 = scmp.eq.s32.totalorder %s1219_s19, 1 }
   0xa   : > { %p1723_p4 = por %p1713_p1, %p52_p0  ;;  %p1220_p5 = scmp.ge.s32.totalorder %s1652_s17, 1 }
   0xb   : > { %p1728_p6 = por %p126_p3, %p52_p0  ;;  %p133_p7 = scmp.lt.s32.totalorder %s1652_s17, 3 }
   0xc   : > { %s144_s26 = sshll.u32 %s2028_s1, 4  ;;  %s1654_s28 = smov [#allocation6]   ;;  %s145_s26 = int_to_ptr.hbm [resolvable:$true] %s144_s26 }
   0xd   : > { %p1736_p8 = pnand %p1220_p5, %p133_p7  ;;  %s146_s29 = sshll.u32 %s1654_s28, 4  ;;  %s147_s29 = int_to_ptr.vmem [resolvable:$true] %s146_s29 }
   0xe   : > { %p1222_p11 = scmp.ge.s32.totalorder %s1652_s17, 2  ;;  %s1655_s30 = smov 64  }
   0xf   : > { %p1436_p9 = pneg %p1736_p8  ;;  %s1656_s4 = smov 4  }
  0x10   : > { %s32_s5 = sadd.s32 1, %s1648_s16  ;;  %s39_s6 = sadd.s32 1, %s1640_s14 }
  0x11   : > { %p1437_p10 = pnand %p1436_p9, %p1713_p1  ;;  %p34_p12 = scmp.ge.s32.totalorder %s32_s5, 2 }
  0x12   : > { %p46_p13 = scmp.ne.s32.totalorder %s1640_s14, %s1636_s13  ;;  %p47_p0 = scmp.eq.s32.totalorder %s1652_s17, 0 }
  0x13   : > { %1439 = dma.hbm_to_vmem [thread:$0]  (!%p1437_p10), %s145_s26, 1152, %s147_s29, [#allocation7], %s1655_s30, %s1655_s30, %s1656_s4  }
  0x14   : > { %s2043_s5 = smov (%p34_p12, %s32_s5), 0  ;;  %p48_p3 = por %p47_p0, %p46_p13 }
  0x15   : > { %p1757_p5 = por %p1717_p2, %p46_p13  ;;  %s36_s8 = ssub.s32 %s1648_s16, %s2043_s5 }
  0x16   : > { %p1449_p7 = scmp.lt.s32.totalorder %s1652_s17, 2  ;;  %p37_p9 = scmp.eq.s32.totalorder %s36_s8, 0 }
  0x17   : > { %s163_s9 = sand.u32 1, %s1640_s14   ;;  %s1426_s18 = smul.u32 144, %s1648_s16 }
  0x18   : > { %s1425_s10 = smul.u32 144, %s163_s9  ;;  %p1441_p10 = pnand %p1449_p7, %p48_p3 }
  0x19   : > { %s1766_s11 = scalar_select %p37_p9, %s1640_s14, %s39_s6  }
  0x1a   : > { %s167_s19 = scalar_lea.vmem [#allocation3], %s1425_s10  ;;  %s172_s28 = scalar_lea.hbm %s2027_s0, %s1426_s18 }
  0x1b   : > { %s175_s24 = sshll.u32 %s167_s19, 4  ;;  %s173_s21 = sshll.u32 %s172_s28, 4  ;;  %s176_s24 = int_to_ptr.vmem [resolvable:$true] %s175_s24  ;;  %s174_s21 = int_to_ptr.hbm [resolvable:$true] %s173_s21 }
  0x1c   : > { %s164_s29 = scalar_lea.sflag [#allocation4], %s163_s9  ;;  %187 = sbr.rel (%p1736_p8) target bundleno = 377 (0x179), region = 32 }
  0x1d   : > { %1443 = dma.hbm_to_vmem [thread:$0]  (!%p1441_p10), %s174_s21, 2304, %s176_s24, %s164_s29, %s1655_s30, %s1655_s30, %s1656_s4  }
  0x1e   : > { %s1778_s6 = sand.u32 (!%p1736_p8), 1, %s1636_s13  }
  0x1f   : > { %s1427_s8 = smul.u32 (!%p1736_p8), 144, %s1778_s6  ;;  %s190_s10 = scalar_lea.sflag (!%p1736_p8), [#allocation4], %s1778_s6 }
  0x21   : > { %s1782_s18 = scalar_lea.vmem [#allocation3], %s1427_s8 }
  0x22   : > { %1619 = dma.done.wait (%p1723_p4), %s190_s10, 2304  }
  0x23   : > { %1621 = vsyncadd (%p1723_p4), %s190_s10, 4294964992 }
  0x24   : > { %1623 = dma.done.wait (%p1713_p1), [#allocation7], 1152  }
  0x25   : > { %1625 = vsyncadd (%p1713_p1), [#allocation7], 4294966144  ;;  %v1408_v0 = vld [vmem:[#allocation6 + $0x10] sm:$0xff]  ;;  %v1411_v1 = vld [vmem:[#allocation6 + $0x28] sm:$0xff]  ;;  %vm369_vm0 = vcmask 392192   ;;  %s1226_s27 = sshll.u32 %s1778_s6, 8 }
  0x26   : > { %v1414_v2 = vld [vmem:[#allocation6 + $0x40] sm:$0xff]  ;;  %423 = vmatpush.bf16.msra.mxu0 %v1408_v0  ;;  %1416 = vmatpush.bf16.msra.mxu3 %v1408_v0  ;;  %v1407_v3 = vld [vmem:[#allocation6 + $0x8] sm:$0xff]  ;;  %v1413_v5 = vld [vmem:[#allocation6 + $0x38] sm:$0xff]  ;;  %s1860_s30 = scalar_lea.vmem [#allocation8], %s1226_s27  ;;  %s1415_s4 = sshll.u32 %s1644_s15, 8 }
  0x27   : > { %577 = vmatpush.bf16.msra.mxu1 %v1411_v1  ;;  %795 = vmatpush.bf16.msra.mxu2 %v1414_v2  ;;  %v1410_v4 = vld [vmem:[#allocation6 + $0x20] sm:$0xff]  ;;  %v1409_v7 = vld [vmem:[#allocation6 + $0x18] sm:$0xff]  ;;  %v1412_v8 = vld [vmem:[#allocation6 + $0x30] sm:$0xff]  ;;  %s1120_s24 = scalar_lea.hbm %s2030_s3, %s1415_s4  ;;  %s1121_s15 = sshll.u32 %s1860_s30, 4  ;;  %s1122_s15 = int_to_ptr.vmem [resolvable:$true] %s1121_s15 }
  0x28   : > { %v1406_v6 = vld [vmem:[#allocation6] sm:$0xff]  ;;  %v1389_v11 = vld [vmem:[%s1782_s18 + $0x8] sm:$0xff]  ;;  %v1391_v14 = vld [vmem:[%s1782_s18 + $0x18] sm:$0xff]  ;;  %s1123_s25 = sshll.u32 %s1120_s24, 4  ;;  %s1108_s26 = scalar_lea.sflag [#allocation5], %s1778_s6  ;;  %s1124_s25 = int_to_ptr.hbm [resolvable:$true] %s1123_s25 }
  0x29   : > { %v1388_v9 = vld [vmem:[%s1782_s18] sm:$0xff]  ;;  %v1390_v12 = vld [vmem:[%s1782_s18 + $0x10] sm:$0xff]  ;;  %v1804_v13 = vld [vmem:[%s1782_s18 + $0x68] sm:$0xff]  ;;  %s1580_s28 = sshra.s32 %s1124_s25, 4  ;;  %s1586_s10 = scalar_lea.hbm %s2030_s3, 512  ;;  %s1581_s28 = int_to_ptr.hbm [resolvable:$true] %s1580_s28 }
  0x2a   : > { %424 = vmatpush.bf16.msra.mxu0 %v1407_v3  ;;  %1417 = vmatpush.bf16.msra.mxu3 %v1407_v3  ;;  %v1794_v10 = vld [vmem:[%s1782_s18 + $0x60] sm:$0xff]  ;;  %v1402_v15 = vld [vmem:[%s1782_s18 + $0x70] sm:$0xff]  ;;  %v1403_v17 = vld [vmem:[%s1782_s18 + $0x78] sm:$0xff]  ;;  %s1582_s21 = scalar_lea.hbm %s1581_s28, 256  ;;  %p1587_p8 = scmp.lt.s32.totalorder %s1581_s28, %s2030_s3 }
  0x2b   : > { %578 = vmatpush.bf16.msra.mxu1 %v1410_v4  ;;  %796 = vmatpush.bf16.msra.mxu2 %v1413_v5  ;;  %v1392_v16 = vld [vmem:[%s1782_s18 + $0x20] sm:$0xff]  ;;  %v1393_v18 = vld [vmem:[%s1782_s18 + $0x28] sm:$0xff]  ;;  %v1394_v19 = vld [vmem:[%s1782_s18 + $0x30] sm:$0xff]  ;;  %p1583_p1 = scmp.ne.s32.totalorder %s1581_s28, %s1582_s21  ;;  %p1588_p12 = scmp.lt.s32.totalorder %s1586_s10, %s1582_s21 }
  0x2c   : > { %v1395_v20 = vld [vmem:[%s1782_s18 + $0x38] sm:$0xff]  ;;  %v1396_v21 = vld [vmem:[%s1782_s18 + $0x40] sm:$0xff]  ;;  %v1397_v23 = vld [vmem:[%s1782_s18 + $0x48] sm:$0xff] }
  0x2d   : > { %v1404_v22 = vld [vmem:[%s1782_s18 + $0x80] sm:$0xff]  ;;  %v1398_v25 = vld [vmem:[%s1782_s18 + $0x50] sm:$0xff]  ;;  %v1399_v41 = vld [vmem:[%s1782_s18 + $0x58] sm:$0xff]  ;;  %p1584_p2 = pnand %p1583_p1, %p1757_p5  ;;  %p1589_p13 = por %p1588_p12, %p1587_p8 }
  0x2e   : > { %425 = vmatpush.bf16.msra.mxu0 %v1406_v6  ;;  %1418 = vmatpush.bf16.msra.mxu3 %v1406_v6  ;;  %v1856_v29 = vld [vmem:[%s2029_s2] ss:$0 sm:$0xff] }
  0x2f   : > { %579 = vmatpush.bf16.msra.mxu1 %v1409_v7  ;;  %797 = vmatpush.bf16.msra.mxu2 %v1412_v8  ;;  %p1585_p4 = pneg %p1584_p2 }
  0x31   : > { %1303 = vmatmul.msk.bf16.vlgmr.msra.gmra.mxu0 %vm369_vm0, %v1388_v9  ;;  %1315 = vmatmul.msk.bf16.vlgmr.msra.gmra.mxu3 %vm369_vm0, %v1794_v10  ;;  %p1590_p0 = pnand %p1589_p13, %p1585_p4 }
  0x32   : > { %1419 = vmatpush.bf16.msrb.mxu3 %v1411_v1  ;;  %1335 = vmatmul.msk.bf16.vlgmr.msra.gmra.mxu1 %vm369_vm0, %v1389_v11 }
  0x33   : > { %1367 = vmatmul.msk.bf16.vlgmr.msra.gmra.mxu2 %vm369_vm0, %v1390_v12 }
  0x36   : > { %1420 = vmatpush.bf16.msrb.mxu3 %v1410_v4 }
  0x3a   : > { %1421 = vmatpush.bf16.msrb.mxu3 %v1409_v7 }
  0x3e   : > { %1422 = vmatpush.bf16.msra.mxu3 %v1414_v2 }
  0x41   : > { %1304 = vmatmul.msk.bf16.gmra.mxu0 %vm369_vm0, %v1389_v11  ;;  %1316 = vmatmul.msk.bf16.gmra.mxu3 %vm369_vm0, %v1804_v13 }
  0x42   : > { %1423 = vmatpush.bf16.msra.mxu3 %v1413_v5  ;;  %1336 = vmatmul.msk.bf16.gmra.mxu1 %vm369_vm0, %v1390_v12 }
  0x43   : > { %1368 = vmatmul.msk.bf16.gmra.mxu2 %vm369_vm0, %v1391_v14 }
  0x46   : > { %1424 = vmatpush.bf16.msra.mxu3 %v1412_v8  ;;  %v1405_v8 = vld [vmem:[%s1782_s18 + $0x88] sm:$0xff] }
  0x51   : > { %1305 = vmatmul.msk.bf16.gmra.mxu0 %vm369_vm0, %v1390_v12  ;;  %1317 = vmatmul.msk.bf16.gmra.mxu3 %vm369_vm0, %v1402_v15 }
  0x52   : > { %1337 = vmatmul.msk.bf16.gmra.mxu1 %vm369_vm0, %v1391_v14 }
  0x53   : > { %1369 = vmatmul.msk.bf16.gmra.mxu2 %vm369_vm0, %v1392_v16 }
  0x61   : > { %1306 = vmatmul.msk.bf16.gmra.mxu0 %vm369_vm0, %v1391_v14  ;;  %1318 = vmatmul.msk.bf16.gmra.mxu3 %vm369_vm0, %v1403_v17 }
  0x62   : > { %1338 = vmatmul.msk.bf16.gmra.mxu1 %vm369_vm0, %v1392_v16 }
  0x63   : > { %1370 = vmatmul.msk.bf16.gmra.mxu2 %vm369_vm0, %v1393_v18 }
  0x71   : > { %1307 = vmatmul.msk.bf16.gmra.mxu0 %vm369_vm0, %v1392_v16  ;;  %1347 = vmatmul.msk.bf16.vlgmr.msrb.gmra.mxu3 %vm369_vm0, %v1804_v13 }
  0x72   : > { %1339 = vmatmul.msk.bf16.gmra.mxu1 %vm369_vm0, %v1393_v18 }
  0x73   : > { %1371 = vmatmul.msk.bf16.gmra.mxu2 %vm369_vm0, %v1394_v19 }
  0x81   : > { %1308 = vmatmul.msk.bf16.gmra.mxu0 %vm369_vm0, %v1393_v18  ;;  %1348 = vmatmul.msk.bf16.gmra.mxu3 %vm369_vm0, %v1402_v15 }
  0x82   : > { %1340 = vmatmul.msk.bf16.gmra.mxu1 %vm369_vm0, %v1394_v19 }
  0x83   : > { %1372 = vmatmul.msk.bf16.gmra.mxu2 %vm369_vm0, %v1395_v20 }
  0x91   : > { %1309 = vmatmul.msk.bf16.gmra.mxu0 %vm369_vm0, %v1394_v19  ;;  %1349 = vmatmul.msk.bf16.gmra.mxu3 %vm369_vm0, %v1403_v17 }
  0x92   : > { %1341 = vmatmul.msk.bf16.gmra.mxu1 %vm369_vm0, %v1395_v20 }
  0x93   : > { %1373 = vmatmul.msk.bf16.gmra.mxu2 %vm369_vm0, %v1396_v21 }
  0xa1   : > { %1310 = vmatmul.msk.bf16.gmra.mxu0 %vm369_vm0, %v1395_v20  ;;  %1350 = vmatmul.msk.bf16.gmra.mxu3 %vm369_vm0, %v1404_v22 }
  0xa2   : > { %1342 = vmatmul.msk.bf16.gmra.mxu1 %vm369_vm0, %v1396_v21 }
  0xa3   : > { %1374 = vmatmul.msk.bf16.gmra.mxu2 %vm369_vm0, %v1397_v23 }
  0xae   : > { %v427_v24 = vpop.f32.mrf.mxu0 }
  0xaf   : > { %v581_v26 = vpop.f32.mrf.mxu1 }
  0xb0   : > { %v693_v27 = vadd.f32 %v581_v26, %v427_v24 }
  0xb1   : > { %1311 = vmatmul.msk.bf16.gmra.mxu0 %vm369_vm0, %v1396_v21  ;;  %1379 = vmatmul.msk.bf16.vlgmr.msra.gmra.mxu3 %vm369_vm0, %v1402_v15 }
  0xb2   : > { %1343 = vmatmul.msk.bf16.gmra.mxu1 %vm369_vm0, %v1397_v23 }
  0xb3   : > { %1375 = vmatmul.msk.bf16.gmra.mxu2 %vm369_vm0, %v1398_v25 }
  0xb4   : > { %v1851_v28 = vpop.f32.mrf.mxu3 }
  0xb6   : > { %v799_v30 = vpop.f32.mrf.mxu2  ;;  %v429_v32 = vpop.f32.mrf.mxu0 }
  0xb7   : > { %v911_v31 = vadd.f32 %v799_v30, %v693_v27  ;;  %v583_v33 = vpop.f32.mrf.mxu1 }
  0xb8   : > { %v694_v36 = vadd.f32 %v583_v33, %v429_v32 }
  0xb9   : > { %v1011_v34 = vadd.f32 %v1856_v29, %v911_v31 }
  0xbb   : > { %v1043_v35 = vmax.f32 %v1011_v34, 0.0 }
  0xbc   : > { %v1863_v37 = vpop.f32.mrf.mxu3 }
  0xbd   : > { %1075 = vst [vmem:[%s1860_s30] sm:$0xff] %v1043_v35 }
  0xbe   : > { %v801_v38 = vpop.f32.mrf.mxu2  ;;  %v432_v40 = vpop.f32.mrf.mxu0 }
  0xbf   : > { %v912_v39 = vadd.f32 %v801_v38, %v694_v36  ;;  %v586_v42 = vpop.f32.mrf.mxu1 }
  0xc0   : > { %v695_v45 = vadd.f32 %v586_v42, %v432_v40 }
  0xc1   : > { %v1012_v43 = vadd.f32 %v1856_v29, %v912_v39  ;;  %1312 = vmatmul.msk.bf16.gmra.mxu0 %vm369_vm0, %v1397_v23  ;;  %1380 = vmatmul.msk.bf16.gmra.mxu3 %vm369_vm0, %v1403_v17 }
  0xc2   : > { %1344 = vmatmul.msk.bf16.gmra.mxu1 %vm369_vm0, %v1398_v25 }
  0xc3   : > { %v1044_v44 = vmax.f32 %v1012_v43, 0.0  ;;  %1376 = vmatmul.msk.bf16.gmra.mxu2 %vm369_vm0, %v1399_v41 }
  0xc4   : > { %v1872_v46 = vpop.f32.mrf.mxu3 }
  0xc5   : > { %1076 = vst [vmem:[%s1860_s30 + $0x8] sm:$0xff] %v1044_v44 }
  0xc6   : > { %v804_v47 = vpop.f32.mrf.mxu2  ;;  %v434_v49 = vpop.f32.mrf.mxu0 }
  0xc7   : > { %v913_v48 = vadd.f32 %v804_v47, %v695_v45  ;;  %v588_v50 = vpop.f32.mrf.mxu1 }
  0xc8   : > { %v696_v53 = vadd.f32 %v588_v50, %v434_v49 }
  0xc9   : > { %v1013_v51 = vadd.f32 %v1856_v29, %v913_v48 }
  0xcb   : > { %v1045_v52 = vmax.f32 %v1013_v51, 0.0 }
  0xcc   : > { %v1876_v54 = vpop.f32.mrf.mxu3 }
  0xcd   : > { %1077 = vst [vmem:[%s1860_s30 + $0x10] sm:$0xff] %v1045_v52 }
  0xce   : > { %v806_v55 = vpop.f32.mrf.mxu2  ;;  %v437_v57 = vpop.f32.mrf.mxu0 }
  0xcf   : > { %v914_v56 = vadd.f32 %v806_v55, %v696_v53  ;;  %v591_v58 = vpop.f32.mrf.mxu1 }
  0xd0   : > { %v697_v61 = vadd.f32 %v591_v58, %v437_v57 }
  0xd1   : > { %v1014_v59 = vadd.f32 %v1856_v29, %v914_v56  ;;  %1313 = vmatmul.msk.bf16.gmra.mxu0 %vm369_vm0, %v1398_v25  ;;  %1381 = vmatmul.msk.bf16.gmra.mxu3 %vm369_vm0, %v1404_v22 }
  0xd2   : > { %1345 = vmatmul.msk.bf16.gmra.mxu1 %vm369_vm0, %v1399_v41 }
  0xd3   : > { %v1046_v60 = vmax.f32 %v1014_v59, 0.0  ;;  %1377 = vmatmul.msk.bf16.gmra.mxu2 %vm369_vm0, %v1794_v10 }
  0xd4   : > { %v1885_v62 = vpop.f32.mrf.mxu3 }
  0xd5   : > { %1078 = vst [vmem:[%s1860_s30 + $0x18] sm:$0xff] %v1046_v60 }
  0xd6   : > { %v809_v63 = vpop.f32.mrf.mxu2  ;;  %v439_v1 = vpop.f32.mrf.mxu0 }
  0xd7   : > { %v915_v0 = vadd.f32 %v809_v63, %v697_v61  ;;  %v593_v2 = vpop.f32.mrf.mxu1 }
  0xd8   : > { %v698_v5 = vadd.f32 %v593_v2, %v439_v1 }
  0xd9   : > { %v1015_v3 = vadd.f32 %v1856_v29, %v915_v0 }
  0xdb   : > { %v1047_v4 = vmax.f32 %v1015_v3, 0.0 }
  0xdc   : > { %v1889_v6 = vpop.f32.mrf.mxu3 }
  0xdd   : > { %1079 = vst [vmem:[%s1860_s30 + $0x20] sm:$0xff] %v1047_v4 }
  0xde   : > { %v811_v7 = vpop.f32.mrf.mxu2  ;;  %v442_v11 = vpop.f32.mrf.mxu0 }
  0xdf   : > { %v916_v9 = vadd.f32 %v811_v7, %v698_v5  ;;  %v596_v12 = vpop.f32.mrf.mxu1 }
  0xe0   : > { %v699_v16 = vadd.f32 %v596_v12, %v442_v11 }
  0xe1   : > { %v1016_v14 = vadd.f32 %v1856_v29, %v916_v9  ;;  %1314 = vmatmul.msk.bf16.gmra.mxu0 %vm369_vm0, %v1399_v41  ;;  %1382 = vmatmul.msk.bf16.gmra.mxu3 %vm369_vm0, %v1405_v8 }
  0xe2   : > { %1346 = vmatmul.msk.bf16.gmra.mxu1 %vm369_vm0, %v1794_v10 }
  0xe3   : > { %v1048_v15 = vmax.f32 %v1016_v14, 0.0  ;;  %1378 = vmatmul.msk.bf16.gmra.mxu2 %vm369_vm0, %v1804_v13 }
  0xe4   : > { %v1900_v17 = vpop.f32.mrf.mxu3 }
  0xe5   : > { %1080 = vst [vmem:[%s1860_s30 + $0x28] sm:$0xff] %v1048_v15 }
  0xe6   : > { %v814_v18 = vpop.f32.mrf.mxu2  ;;  %v444_v20 = vpop.f32.mrf.mxu0 }
  0xe7   : > { %v917_v19 = vadd.f32 %v814_v18, %v699_v16  ;;  %v598_v21 = vpop.f32.mrf.mxu1 }
  0xe8   : > { %v700_v24 = vadd.f32 %v598_v21, %v444_v20 }
  0xe9   : > { %v1017_v22 = vadd.f32 %v1856_v29, %v917_v19 }
  0xeb   : > { %v1049_v23 = vmax.f32 %v1017_v22, 0.0 }
  0xec   : > { %v1904_v25 = vpop.f32.mrf.mxu3 }
  0xed   : > { %1081 = vst [vmem:[%s1860_s30 + $0x30] sm:$0xff] %v1049_v23 }
  0xee   : > { %v816_v10 = vpop.f32.mrf.mxu2  ;;  %v447_v27 = vpop.f32.mrf.mxu0 }
  0xef   : > { %v918_v26 = vadd.f32 %v816_v10, %v700_v24  ;;  %v601_v13 = vpop.f32.mrf.mxu1 }
  0xf0   : > { %v701_v32 = vadd.f32 %v601_v13, %v447_v27 }
  0xf1   : > { %v1018_v30 = vadd.f32 %v1856_v29, %v918_v26 }
  0xf3   : > { %v1050_v31 = vmax.f32 %v1018_v30, 0.0 }
  0xf4   : > { %v1908_v33 = vpop.f32.mrf.mxu3 }
  0xf5   : > { %1082 = vst [vmem:[%s1860_s30 + $0x38] sm:$0xff] %v1050_v31 }
  0xf6   : > { %v819_v34 = vpop.f32.mrf.mxu2  ;;  %v449_v36 = vpop.f32.mrf.mxu0 }
  0xf7   : > { %v919_v35 = vadd.f32 %v819_v34, %v701_v32  ;;  %v603_v38 = vpop.f32.mrf.mxu1 }
  0xf8   : > { %v702_v41 = vadd.f32 %v603_v38, %v449_v36 }
  0xf9   : > { %v1019_v39 = vadd.f32 %v1856_v29, %v919_v35 }
  0xfb   : > { %v1051_v40 = vmax.f32 %v1019_v39, 0.0 }
  0xfc   : > { %v1912_v42 = vpop.f32.mrf.mxu3 }
  0xfd   : > { %1083 = vst [vmem:[%s1860_s30 + $0x40] sm:$0xff] %v1051_v40 }
  0xfe   : > { %v821_v43 = vpop.f32.mrf.mxu2  ;;  %v452_v45 = vpop.f32.mrf.mxu0 }
  0xff   : > { %v920_v44 = vadd.f32 %v821_v43, %v702_v41  ;;  %v606_v47 = vpop.f32.mrf.mxu1 }
 0x100   : > { %v703_v50 = vadd.f32 %v606_v47, %v452_v45  ;;  %v717_v45 = vadd.f32 %v1908_v33, %v1851_v28 }
 0x101   : > { %v1020_v48 = vadd.f32 %v1856_v29, %v920_v44 }
 0x103   : > { %v1052_v49 = vmax.f32 %v1020_v48, 0.0 }
 0x104   : > { %v1916_v51 = vpop.f32.mrf.mxu3 }
 0x105   : > { %1084 = vst [vmem:[%s1860_s30 + $0x48] sm:$0xff] %v1052_v49 }
 0x106   : > { %v824_v52 = vpop.f32.mrf.mxu2  ;;  %v454_v55 = vpop.f32.mrf.mxu0 }
 0x107   : > { %v921_v53 = vadd.f32 %v824_v52, %v703_v50  ;;  %v608_v56 = vpop.f32.mrf.mxu1 }
 0x108   : > { %v704_v59 = vadd.f32 %v608_v56, %v454_v55 }
 0x109   : > { %v1021_v57 = vadd.f32 %v1856_v29, %v921_v53 }
 0x10b   : > { %v1053_v58 = vmax.f32 %v1021_v57, 0.0 }
 0x10c   : > { %v1920_v60 = vpop.f32.mrf.mxu3 }
 0x10d   : > { %1085 = vst [vmem:[%s1860_s30 + $0x50] sm:$0xff] %v1053_v58 }
 0x10e   : > { %v826_v61 = vpop.f32.mrf.mxu2  ;;  %v457_v0 = vpop.f32.mrf.mxu0 }
 0x10f   : > { %v922_v63 = vadd.f32 %v826_v61, %v704_v59  ;;  %v611_v1 = vpop.f32.mrf.mxu1  ;;  %v718_v59 = vadd.f32 %v1912_v42, %v1863_v37  ;;  %v719_v37 = vadd.f32 %v1916_v51, %v1872_v46 }
 0x110   : > { %v705_v4 = vadd.f32 %v611_v1, %v457_v0 }
 0x111   : > { %v1022_v2 = vadd.f32 %v1856_v29, %v922_v63 }
 0x113   : > { %v1054_v3 = vmax.f32 %v1022_v2, 0.0 }
 0x114   : > { %v1924_v5 = vpop.f32.mrf.mxu3 }
 0x115   : > { %1086 = vst [vmem:[%s1860_s30 + $0x58] sm:$0xff] %v1054_v3 }
 0x116   : > { %v829_v7 = vpop.f32.mrf.mxu2  ;;  %v459_v9 = vpop.f32.mrf.mxu0 }
 0x117   : > { %v923_v8 = vadd.f32 %v829_v7, %v705_v4  ;;  %v613_v11 = vpop.f32.mrf.mxu1 }
 0x118   : > { %v706_v15 = vadd.f32 %v613_v11, %v459_v9 }
 0x119   : > { %v1023_v12 = vadd.f32 %v1856_v29, %v923_v8 }
 0x11b   : > { %v1055_v14 = vmax.f32 %v1023_v12, 0.0 }
 0x11c   : > { %v1928_v16 = vpop.f32.mrf.mxu3 }
 0x11d   : > { %1087 = vst [vmem:[%s1860_s30 + $0x60] sm:$0xff] %v1055_v14 }
 0x11e   : > { %v831_v18 = vpop.f32.mrf.mxu2  ;;  %v462_v20 = vpop.f32.mrf.mxu0 }
 0x11f   : > { %v924_v19 = vadd.f32 %v831_v18, %v706_v15  ;;  %v616_v21 = vpop.f32.mrf.mxu1 }
 0x120   : > { %v707_v24 = vadd.f32 %v616_v21, %v462_v20 }
 0x121   : > { %v1024_v22 = vadd.f32 %v1856_v29, %v924_v19 }
 0x123   : > { %v1056_v23 = vmax.f32 %v1024_v22, 0.0 }
 0x124   : > { %v1932_v10 = vpop.f32.mrf.mxu3 }
 0x125   : > { %1088 = vst [vmem:[%s1860_s30 + $0x68] sm:$0xff] %v1056_v23  ;;  %v720_v23 = vadd.f32 %v1920_v60, %v1876_v54  ;;  %v721_v54 = vadd.f32 %v1924_v5, %v1885_v62 }
 0x126   : > { %v834_v26 = vpop.f32.mrf.mxu2  ;;  %v464_v13 = vpop.f32.mrf.mxu0 }
 0x127   : > { %v925_v27 = vadd.f32 %v834_v26, %v707_v24  ;;  %v618_v30 = vpop.f32.mrf.mxu1 }
 0x128   : > { %v708_v34 = vadd.f32 %v618_v30, %v464_v13 }
 0x129   : > { %v1025_v31 = vadd.f32 %v1856_v29, %v925_v27 }
 0x12b   : > { %v1057_v32 = vmax.f32 %v1025_v31, 0.0 }
 0x12c   : > { %v1936_v35 = vpop.f32.mrf.mxu3 }
 0x12d   : > { %1089 = vst [vmem:[%s1860_s30 + $0x70] sm:$0xff] %v1057_v32 }
 0x12e   : > { %v836_v36 = vpop.f32.mrf.mxu2  ;;  %v467_v39 = vpop.f32.mrf.mxu0 }
 0x12f   : > { %v926_v38 = vadd.f32 %v836_v36, %v708_v34  ;;  %v621_v40 = vpop.f32.mrf.mxu1 }
 0x130   : > { %v709_v44 = vadd.f32 %v621_v40, %v467_v39 }
 0x131   : > { %v1026_v41 = vadd.f32 %v1856_v29, %v926_v38 }
 0x133   : > { %v1058_v43 = vmax.f32 %v1026_v41, 0.0 }
 0x134   : > { %v859_v47 = vpop.f32.mrf.mxu3 }
 0x135   : > { %1090 = vst [vmem:[%s1860_s30 + $0x78] sm:$0xff] %v1058_v43  ;;  %v935_v49 = vadd.f32 %v859_v47, %v717_v45 }
 0x136   : > { %v839_v48 = vpop.f32.mrf.mxu2  ;;  %v469_v52 = vpop.f32.mrf.mxu0 }
 0x137   : > { %v927_v50 = vadd.f32 %v839_v48, %v709_v44  ;;  %v1035_v53 = vadd.f32 %v1856_v29, %v935_v49  ;;  %v623_v55 = vpop.f32.mrf.mxu1 }
 0x138   : > { %v710_v28 = vadd.f32 %v623_v55, %v469_v52 }
 0x139   : > { %v1027_v56 = vadd.f32 %v1856_v29, %v927_v50  ;;  %v1067_v57 = vmax.f32 %v1035_v53, 0.0  ;;  %v722_v50 = vadd.f32 %v1928_v16, %v1889_v6  ;;  %v723_v6 = vadd.f32 %v1932_v10, %v1900_v17 }
 0x13a   : > { %v724_v17 = vadd.f32 %v1936_v35, %v1904_v25 }
 0x13b   : > { %v1059_v58 = vmax.f32 %v1027_v56, 0.0  ;;  %1099 = vst [vmem:[%s1860_s30 + $0xc0] sm:$0xff] %v1067_v57 }
 0x13c   : > { %v861_v33 = vpop.f32.mrf.mxu3 }
 0x13d   : > { %1091 = vst [vmem:[%s1860_s30 + $0x80] sm:$0xff] %v1059_v58  ;;  %v936_v63 = vadd.f32 %v861_v33, %v718_v59 }
 0x13e   : > { %v841_v61 = vpop.f32.mrf.mxu2  ;;  %v472_v1 = vpop.f32.mrf.mxu0 }
 0x13f   : > { %v928_v0 = vadd.f32 %v841_v61, %v710_v28  ;;  %v1036_v2 = vadd.f32 %v1856_v29, %v936_v63  ;;  %v626_v3 = vpop.f32.mrf.mxu1 }
 0x140   : > { %v711_v9 = vadd.f32 %v626_v3, %v472_v1 }
 0x141   : > { %v1028_v4 = vadd.f32 %v1856_v29, %v928_v0  ;;  %v1068_v7 = vmax.f32 %v1036_v2, 0.0 }
 0x143   : > { %v1060_v8 = vmax.f32 %v1028_v4, 0.0  ;;  %1100 = vst [vmem:[%s1860_s30 + $0xc8] sm:$0xff] %v1068_v7 }
 0x144   : > { %v864_v42 = vpop.f32.mrf.mxu3 }
 0x145   : > { %1092 = vst [vmem:[%s1860_s30 + $0x88] sm:$0xff] %v1060_v8  ;;  %v937_v12 = vadd.f32 %v864_v42, %v719_v37 }
 0x146   : > { %v844_v11 = vpop.f32.mrf.mxu2  ;;  %v474_v15 = vpop.f32.mrf.mxu0 }
 0x147   : > { %v929_v14 = vadd.f32 %v844_v11, %v711_v9  ;;  %v1037_v18 = vadd.f32 %v1856_v29, %v937_v12  ;;  %v628_v19 = vpop.f32.mrf.mxu1 }
 0x148   : > { %v712_v46 = vadd.f32 %v628_v19, %v474_v15 }
 0x149   : > { %v1029_v20 = vadd.f32 %v1856_v29, %v929_v14  ;;  %v1069_v21 = vmax.f32 %v1037_v18, 0.0 }
 0x14b   : > { %v1061_v22 = vmax.f32 %v1029_v20, 0.0  ;;  %1101 = vst [vmem:[%s1860_s30 + $0xd0] sm:$0xff] %v1069_v21 }
 0x14c   : > { %v866_v51 = vpop.f32.mrf.mxu3 }
 0x14d   : > { %1093 = vst [vmem:[%s1860_s30 + $0x90] sm:$0xff] %v1061_v22  ;;  %v938_v26 = vadd.f32 %v866_v51, %v720_v23 }
 0x14e   : > { %v846_v24 = vpop.f32.mrf.mxu2  ;;  %v477_v13 = vpop.f32.mrf.mxu0 }
 0x14f   : > { %v930_v27 = vadd.f32 %v846_v24, %v712_v46  ;;  %v1038_v30 = vadd.f32 %v1856_v29, %v938_v26  ;;  %v631_v31 = vpop.f32.mrf.mxu1 }
 0x150   : > { %v713_v38 = vadd.f32 %v631_v31, %v477_v13 }
 0x151   : > { %v1030_v32 = vadd.f32 %v1856_v29, %v930_v27  ;;  %v1070_v34 = vmax.f32 %v1038_v30, 0.0 }
 0x153   : > { %v1062_v36 = vmax.f32 %v1030_v32, 0.0  ;;  %1102 = vst [vmem:[%s1860_s30 + $0xd8] sm:$0xff] %v1070_v34 }
 0x154   : > { %v869_v60 = vpop.f32.mrf.mxu3 }
 0x155   : > { %1094 = vst [vmem:[%s1860_s30 + $0x98] sm:$0xff] %v1062_v36  ;;  %v939_v40 = vadd.f32 %v869_v60, %v721_v54 }
 0x156   : > { %v849_v39 = vpop.f32.mrf.mxu2  ;;  %v479_v43 = vpop.f32.mrf.mxu0 }
 0x157   : > { %v931_v41 = vadd.f32 %v849_v39, %v713_v38  ;;  %v1039_v44 = vadd.f32 %v1856_v29, %v939_v40  ;;  %v633_v45 = vpop.f32.mrf.mxu1 }
 0x158   : > { %v714_v62 = vadd.f32 %v633_v45, %v479_v43 }
 0x159   : > { %v1031_v47 = vadd.f32 %v1856_v29, %v931_v41  ;;  %v1071_v48 = vmax.f32 %v1039_v44, 0.0 }
 0x15b   : > { %v1063_v49 = vmax.f32 %v1031_v47, 0.0  ;;  %1103 = vst [vmem:[%s1860_s30 + $0xe0] sm:$0xff] %v1071_v48 }
 0x15c   : > { %v871_v5 = vpop.f32.mrf.mxu3 }
 0x15d   : > { %1095 = vst [vmem:[%s1860_s30 + $0xa0] sm:$0xff] %v1063_v49  ;;  %v940_v53 = vadd.f32 %v871_v5, %v722_v50 }
 0x15e   : > { %v851_v52 = vpop.f32.mrf.mxu2  ;;  %v482_v57 = vpop.f32.mrf.mxu0 }
 0x15f   : > { %v932_v55 = vadd.f32 %v851_v52, %v714_v62  ;;  %v1040_v56 = vadd.f32 %v1856_v29, %v940_v53  ;;  %v636_v58 = vpop.f32.mrf.mxu1 }
 0x160   : > { %v715_v61 = vadd.f32 %v636_v58, %v482_v57 }
 0x161   : > { %v1032_v59 = vadd.f32 %v1856_v29, %v932_v55  ;;  %v1072_v28 = vmax.f32 %v1040_v56, 0.0 }
 0x163   : > { %v1064_v33 = vmax.f32 %v1032_v59, 0.0  ;;  %1104 = vst [vmem:[%s1860_s30 + $0xe8] sm:$0xff] %v1072_v28 }
 0x164   : > { %v874_v16 = vpop.f32.mrf.mxu3 }
 0x165   : > { %1096 = vst [vmem:[%s1860_s30 + $0xa8] sm:$0xff] %v1064_v33  ;;  %v941_v0 = vadd.f32 %v874_v16, %v723_v6 }
 0x166   : > { %v854_v63 = vpop.f32.mrf.mxu2  ;;  %v484_v7 = vpop.f32.mrf.mxu0 }
 0x167   : > { %v933_v1 = vadd.f32 %v854_v63, %v715_v61  ;;  %v1041_v2 = vadd.f32 %v1856_v29, %v941_v0  ;;  %v638_v8 = vpop.f32.mrf.mxu1 }
 0x168   : > { %v716_v10 = vadd.f32 %v638_v8, %v484_v7 }
 0x169   : > { %v1033_v3 = vadd.f32 %v1856_v29, %v933_v1  ;;  %v1073_v4 = vmax.f32 %v1041_v2, 0.0 }
 0x16b   : > { %v1065_v9 = vmax.f32 %v1033_v3, 0.0  ;;  %1105 = vst [vmem:[%s1860_s30 + $0xf0] sm:$0xff] %v1073_v4 }
 0x16c   : > { %v876_v37 = vpop.f32.mrf.mxu3 }
 0x16d   : > { %1097 = vst [vmem:[%s1860_s30 + $0xb0] sm:$0xff] %v1065_v9  ;;  %v942_v11 = vadd.f32 %v876_v37, %v724_v17 }
 0x16e   : > { %v856_v42 = vpop.f32.mrf.mxu2 }
 0x16f   : > { %v934_v12 = vadd.f32 %v856_v42, %v716_v10  ;;  %v1042_v14 = vadd.f32 %v1856_v29, %v942_v11 }
 0x171   : > { %v1034_v25 = vadd.f32 %v1856_v29, %v934_v12  ;;  %v1074_v35 = vmax.f32 %v1042_v14, 0.0 }
 0x173   : > { %v1066_v15 = vmax.f32 %v1034_v25, 0.0  ;;  %1106 = vst [vmem:[%s1860_s30 + $0xf8] sm:$0xff] %v1074_v35 }
 0x175   : > { %1098 = vst [vmem:[%s1860_s30 + $0xb8] sm:$0xff] %v1066_v15 }
 0x176   : > { %1593 = shalt.err (!%p1590_p0)
}
 0x177   : > { %s1657_s6 = smov 128   ;;  %s1658_s22 = smov 8  }
 0x178   : > { %1434 = dma.vmem_to_hbm [thread:$0]  (%p1757_p5), %s1122_s15, 4096, %s1124_s25, %s1108_s26, %s1657_s6, %s1657_s6, %s1658_s22  }
 0x179 PF: > { %s1138_s27 = sand.u32 1, %s1632_s12   ;;  %p1445_p3 = pnand %p1222_p11, %p1728_p6 }
 0x17a   : > { %s1139_s30 = scalar_lea.sflag [#allocation5], %s1138_s27 }
 0x17b   : > { %p1446_p7 = pneg %p1445_p3 }
 0x17d   : > { %1627 = dma.done.wait (%p1446_p7), %s1139_s30, 4096  }
 0x17e   : > { %1629 = vsyncadd (%p1446_p7), %s1139_s30, 4294963200  ;;  %s20_s17 = sadd.s32 1, %s1652_s17   ;;  %s2037_s12 = smov %s1636_s13 }
 0x17f   : > { %p17_p9 = scmp.ge.s32.totalorder %s20_s17, 4   ;;  %s2038_s13 = smov %s1640_s14 }
 0x180   : > { %s2039_s14 = smov %s1766_s11  ;;  %s2040_s15 = smov %s1648_s16 }
 0x181   : > { %s2041_s16 = smov %s2043_s5  ;;  %19 = sbr.rel (!%p17_p9) target bundleno = 7 (0x7), region = 84 }
 0x186   :  { %1145 = vsyncpa [#allocation4], 1 }
 0x187   :  { %1147 = vsyncpa [#allocation4 + $0x1], 1 }
 0x188   :  { %1148 = vsyncpa [#allocation7], 1 }
 0x189   :  { %1149 = vsyncpa [#allocation5], 1 }
 0x18a   :  { %1151 = vsyncpa [#allocation5 + $0x1], 1 }

</bundles_post_ra>
